<compile_context>
chip_gen: v7x
topology: tpu7x:2x2x1
jax: 0.10.0
libtpu: 0.0.40
codegen_flags: <defaults>
</compile_context>

<pallas_src>
import jax
import jax.numpy as jnp
from jax.experimental import pallas as pl
from jax.experimental.pallas import tpu as pltpu

MIN_VALUE = 0.5
MAX_VALUE = 0.2

LANES = 128           # lane-dense last dim -> unmasked full-vreg stores
TILE_ROWS = 8192      # 8192 x 128 x 4B = 4 MiB per f32 tile (v7x-sized)
MIN_GRID_STEPS = 4    # keep >= 4 steps on mid/large inputs so both v7x TCs work


def _fused_kernel(w_ref, x_ref, o_ref):
    # w_ref: (1,) f32 conv weight in SMEM
    # x_ref / o_ref: (block_rows, LANES) lane-dense tiles in VMEM
    w = w_ref[0]
    y = x_ref[...].astype(jnp.float32) * w     # ConvTranspose2d(1,1,1,no bias) == scalar mul
    y = jnp.maximum(y, MIN_VALUE)               # torch.clamp_min(x2, min_value)
    y = jnp.minimum(y, -MAX_VALUE)              # torch.clamp_max(x3, -max_value)
    o_ref[...] = (MIN_VALUE * y).astype(o_ref.dtype)   # min_value * x4 (NaN-propagating)


def _run_slab(x2d, w_flat, *, alias_input):
    rows, lanes = x2d.shape

    # Tile the row axis.  For mid/large inputs keep at least MIN_GRID_STEPS
    # grid steps (so the "parallel" axis can shard across both v7x TCs);
    # tiny inputs collapse to one full-extent block.
    if rows > 1024:
        cap = -(-rows // MIN_GRID_STEPS)        # cdiv(rows, MIN_GRID_STEPS)
        cap = -(-cap // 16) * 16                # round up to sublane multiple (f32/bf16 safe)
        block_rows = min(TILE_ROWS, cap)
    else:
        block_rows = rows
    grid = (pl.cdiv(rows, block_rows),)

    nbytes = rows * lanes * x2d.dtype.itemsize
    cost = pl.CostEstimate(
        flops=4 * rows * lanes,                 # mul, max, min, mul per element
        transcendentals=0,
        bytes_accessed=2 * nbytes + 4,          # read x + write out + scalar weight
    )

    return pl.pallas_call(
        _fused_kernel,
        out_shape=jax.ShapeDtypeStruct((rows, lanes), x2d.dtype),
        grid=grid,
        in_specs=[
            pl.BlockSpec(memory_space=pltpu.MemorySpace.SMEM),    # scalar weight, untiled
            pl.BlockSpec((block_rows, LANES), lambda i: (i, 0)),  # tiled, auto double-buffered
        ],
        out_specs=pl.BlockSpec((block_rows, LANES), lambda i: (i, 0)),
        input_output_aliases={1: 0} if alias_input else {},
        cost_estimate=cost,
        compiler_params=pltpu.CompilerParams(
            dimension_semantics=("parallel",),   # v7x: shard tiles across both TCs
            vmem_limit_bytes=40 << 20,           # explicit scoped-VMEM budget (v5e/v6e/v7x safe)
        ),
    )(w_flat, x2d)


def model_forward(x_nchw, weight):
    N, C, H, W = x_nchw.shape
    total = N * C * H * W
    w_flat = weight.reshape(1).astype(jnp.float32)   # keep scalar weight f32 in SMEM

    # Purely elementwise -> logical layout is free.  Present a lane-dense
    # (rows, 128) slab.  Copy-free whenever total % 128 == 0 (true for the
    # module's shapes); only genuinely ragged sizes pay a pad + de-pad copy.
    if total % LANES == 0:
        x2d = x_nchw.reshape(total // LANES, LANES)
        out2d = _run_slab(x2d, w_flat, alias_input=False)  # slab aliases the input; no in-place
        return out2d.reshape(N, C, H, W)

    # Ragged fallback: pad to a 128 multiple; the padded slab is a temporary,
    # so it is safe (and free under jit) to write it in place.
    pad = (-total) % LANES
    x_flat = jnp.pad(x_nchw.reshape(-1), (0, pad))
    out2d = _run_slab(x_flat.reshape(-1, LANES), w_flat, alias_input=True)
    return out2d.reshape(-1)[:total].reshape(N, C, H, W)


if __name__ == "__main__":
    key = jax.random.PRNGKey(0)
    k_x, k_w = jax.random.split(key)

    # ConvTranspose2d(1, 1, 1) requires a single input channel
    # -> small test shape (N=2, C=1, H=16, W=16).
    x = jax.random.normal(k_x, (2, 1, 16, 16), dtype=jnp.float32)

    # Deterministic weight for ConvTranspose2d(1, 1, 1, bias=False):
    # weight shape (in_ch=1, out_ch=1, kH=1, kW=1).
    weight = jax.random.uniform(k_w, (1, 1, 1, 1),
                                minval=-1.0, maxval=1.0, dtype=jnp.float32)

    def reference(xv, wv):
        y = xv * wv.reshape(())
        y = jnp.maximum(y, MIN_VALUE)
        y = jnp.minimum(y, -MAX_VALUE)
        return MIN_VALUE * y

    fwd = jax.jit(model_forward)

    # Primary (128-aligned, copy-free) path.
    ref = reference(x, weight)            # computed before the kernel runs
    out = fwd(x, weight)
    jax.block_until_ready(out)
    assert out.shape == x.shape
    assert jnp.allclose(out, ref, atol=1e-6), "mismatch vs reference"

    # Ragged (non-multiple-of-128) path with NaN/Inf probes.
    x_ragged = jax.random.normal(k_x, (1, 1, 9, 13), dtype=jnp.float32)
    x_ragged = x_ragged.at[0, 0, 0, 0].set(jnp.nan)
    x_ragged = x_ragged.at[0, 0, 1, 1].set(jnp.inf)
    x_ragged = x_ragged.at[0, 0, 2, 2].set(-jnp.inf)
    ref_r = reference(x_ragged, weight)
    out_r = fwd(x_ragged, weight)
    jax.block_until_ready(out_r)
    assert out_r.shape == x_ragged.shape
    assert jnp.allclose(out_r, ref_r, atol=1e-6, equal_nan=True), "ragged/NaN mismatch"

    print("KERNEL_OK")
</pallas_src>

<mosaic_0001>
module attributes {stable_mosaic.version = 11 : i64} {
  func.func @_fused_kernel(%arg0: i32, %arg1: memref<1xf32, #tpu.memory_space<smem>>, %arg2: memref<4x128xf32, #tpu.memory_space<vmem>>, %arg3: memref<4x128xf32, #tpu.memory_space<vmem>>) attributes {dimension_semantics = [#tpu.dimension_semantics<parallel>], iteration_bounds = array<i64: 1>, scalar_prefetch = 0 : i64, scratch_operands = 0 : i64, tpu.core_type = #tpu.core_type<tc>, window_params = [{transform_indices = @transform_0, window_bounds = array<i64: 1>}, {transform_indices = @transform_1, window_bounds = array<i64: 4, 128>}, {transform_indices = @transform_2, window_bounds = array<i64: 4, 128>}]} {
    %c0 = arith.constant 0 : index
    %0 = memref.load %arg1[%c0] : memref<1xf32, #tpu.memory_space<smem>>
    %c0_0 = arith.constant 0 : index
    %c0_1 = arith.constant 0 : index
    %1 = vector.load %arg2[%c0_0, %c0_1] : memref<4x128xf32, #tpu.memory_space<vmem>>, vector<4x128xf32>
    %2 = vector.broadcast %0 : f32 to vector<4x128xf32>
    %3 = arith.mulf %1, %2 : vector<4x128xf32>
    %cst = arith.constant 5.000000e-01 : f32
    %4 = vector.broadcast %cst : f32 to vector<4x128xf32>
    %5 = arith.maximumf %3, %4 : vector<4x128xf32>
    %cst_2 = arith.constant -2.000000e-01 : f32
    %6 = vector.broadcast %cst_2 : f32 to vector<4x128xf32>
    %7 = arith.minimumf %5, %6 : vector<4x128xf32>
    %cst_3 = arith.constant 5.000000e-01 : f32
    %8 = vector.broadcast %cst_3 : f32 to vector<4x128xf32>
    %9 = arith.mulf %8, %7 : vector<4x128xf32>
    %c0_4 = arith.constant 0 : index
    %c0_5 = arith.constant 0 : index
    %10 = vector.load %arg3[%c0_4, %c0_5] : memref<4x128xf32, #tpu.memory_space<vmem>>, vector<4x128xf32>
    tpu.vector_store %arg3[%c0_4, %c0_5], %9 {strides = array<i32>} : memref<4x128xf32, #tpu.memory_space<vmem>>, vector<4x128xf32>,
    return
  }
  func.func @transform_0(%arg0: i32) -> i32 {
    %c0_i32 = arith.constant 0 : i32
    %c0_i32_0 = arith.constant 0 : i32
    return %c0_i32 : i32
  }
  func.func @transform_1(%arg0: i32) -> (i32, i32) {
    %c0_i32 = arith.constant 0 : i32
    %c0_i32_0 = arith.constant 0 : i32
    return %arg0, %c0_i32 : i32, i32
  }
  func.func @transform_2(%arg0: i32) -> (i32, i32) {
    %c0_i32 = arith.constant 0 : i32
    %c0_i32_0 = arith.constant 0 : i32
    return %arg0, %c0_i32 : i32, i32
  }
}

</mosaic_0001>

<bundles_post_ra>
// kernel: model_forward.1
= control target key start
LH: loop header
LB: loop body
LE: loop exit
PB: predicated region body
PF: predicated region fallthrough
CT: control target
= control target key end

     0   :  { %s48_s0 = inlined_call_operand.<no memory space> [shape: f32[1], index: 0, kind: input, shape index: {}]   ;;  %s49_s1 = inlined_call_operand.vmem [shape: f32[4,128], index: 1, kind: input, shape index: {}]   ;;  %s50_s2 = inlined_call_operand.vmem [shape: f32[4,128], index: 2, kind: output, shape index: {}]  }
   0x1   :  { %v13_v0 = vld [vmem:[%s49_s1] sm:$0xf]  ;;  %v14_v1 = vstv %s48_s0 }
   0x2   :  { %v15_v2 = vmul.f32 %v14_v1, %v13_v0 }
   0x4   :  { %v16_v3 = vmax.f32 %v15_v2, 0.5 }
   0x6   :  { %v17_v4 = vmin.f32 %v16_v3, -0.2 }
   0x8   :  { %v18_v5 = vmul.f32 0.5, %v17_v4 }
   0xa   :  { %19 = vst [vmem:[%s50_s2] sm:$0xf] %v18_v5 }

</bundles_post_ra>
